<compile_context>
chip_gen: v6e
topology: v6e:2x2x1
jax: 0.10.0
libtpu: 0.0.40
codegen_flags: <defaults>
</compile_context>

<pallas_src>
import math

import jax
import jax.numpy as jnp
from jax.experimental import pallas as pl
from jax.experimental.pallas import tpu as pltpu


def _min_kernel(x_ref, y_ref, o_ref):
    # Cast in VMEM (inputs arrive in native dtype) and let jnp.minimum handle
    # any in-kernel broadcasting of size-1 block axes.
    x = x_ref[...].astype(o_ref.dtype)
    y = y_ref[...].astype(o_ref.dtype)
    o_ref[...] = jnp.minimum(x, y)


# Lane-dense candidate widths (multiples of 128), widest first.
_COL_CANDIDATES = (8192, 4096, 2048, 1024, 512, 256, 128)
# Widest column block for the generic N-D path.
_MAX_COL_BLOCK = 2048


def _sublane_multiple(dtype):
    # f32/i32 -> 8, bf16/f16 -> 16, int8/fp8 -> 32
    return max(8, 32 // jnp.dtype(dtype).itemsize)


def _block_budget():
    """(per-operand block bytes, vmem_limit_bytes) tuned per TPU generation."""
    try:
        vmem = pltpu.get_tpu_info().vmem_capacity_bytes
    except Exception:  # interpret mode / older jax: be conservative.
        vmem = 64 * 1024 * 1024
    if vmem > 96 * 1024 * 1024:
        # v5e / v6e: 128 MiB physical -> 8 MiB blocks, 3 ops x 2 bufs = 48 MiB.
        return 8 * 1024 * 1024, 56 * 1024 * 1024
    # v7x (64 MiB physical) and unknown chips: 4 MiB blocks -> 24 MiB buffers.
    return 4 * 1024 * 1024, 32 * 1024 * 1024


def _fast_call(x, y, out_dtype, total, block_bytes, vmem_limit):
    """Same-shape inputs whose element count is a multiple of 128.

    Flattens to a lane-dense (rows, cols) slab so stores lower to unmasked
    vst; block size is picked from the per-generation VMEM budget.
    """
    cols = next(c for c in _COL_CANDIDATES if total % c == 0)
    rows = total // cols
    x2 = x.reshape(rows, cols)  # row-major flatten: bitcast, no HBM pass
    y2 = y.reshape(rows, cols)

    out_itemsize = jnp.dtype(out_dtype).itemsize
    sub_mult = max(_sublane_multiple(d) for d in (x.dtype, y.dtype, out_dtype))

    target = max(1, block_bytes // (cols * out_itemsize))
    if target >= rows:
        block_rows = rows
        # Split one big block in two so both v7x TensorCores get work when the
        # problem is big enough to matter (>= 512 KiB of output).
        if rows >= 2 * sub_mult and rows * cols * out_itemsize >= (1 << 19):
            block_rows = max(sub_mult, ((rows // 2) // sub_mult) * sub_mult)
    else:
        block_rows = max(sub_mult, (target // sub_mult) * sub_mult)
        steps = pl.cdiv(rows, block_rows)
        if steps > 1 and steps % 2 == 1:
            # Prefer an even step count so the two v7x cores stay balanced.
            alt = pl.cdiv(rows, steps + 1)
            alt = pl.cdiv(alt, sub_mult) * sub_mult
            alt = min(alt, block_rows)
            if alt >= sub_mult and pl.cdiv(rows, alt) % 2 == 0:
                block_rows = alt

    grid = (pl.cdiv(rows, block_rows),)
    bytes_accessed = (x.size * x.dtype.itemsize + y.size * y.dtype.itemsize
                      + total * out_itemsize)

    return pl.pallas_call(
        _min_kernel,
        out_shape=jax.ShapeDtypeStruct((rows, cols), out_dtype),
        grid=grid,
        in_specs=[
            pl.BlockSpec((block_rows, cols), lambda i: (i, 0)),
            pl.BlockSpec((block_rows, cols), lambda i: (i, 0)),
        ],
        out_specs=pl.BlockSpec((block_rows, cols), lambda i: (i, 0)),
        compiler_params=pltpu.CompilerParams(
            dimension_semantics=("parallel",),
            vmem_limit_bytes=vmem_limit,
        ),
        cost_estimate=pl.CostEstimate(
            flops=total, transcendentals=0, bytes_accessed=bytes_accessed),
    )(x2, y2)


def _generic_call(x, y, out_shape, out_dtype, total, block_bytes, vmem_limit):
    """Broadcasting and/or ragged shapes.

    N-D grid over leading dims + tiled trailing two dims; broadcast operands
    get index 0 (and block size 1) along broadcast axes, tail blocks are
    partial (masked output writes) -- no pad/slice HBM passes.
    """
    rank = max(2, len(out_shape))
    oshape = (1,) * (rank - len(out_shape)) + tuple(out_shape)
    xshape = (1,) * (rank - x.ndim) + tuple(x.shape)
    yshape = (1,) * (rank - y.ndim) + tuple(y.shape)
    x = x.reshape(xshape)
    y = y.reshape(yshape)

    out_itemsize = jnp.dtype(out_dtype).itemsize
    sub_mult = max(_sublane_multiple(d) for d in (x.dtype, y.dtype, out_dtype))

    R, C = oshape[-2], oshape[-1]
    bc = C if C <= _MAX_COL_BLOCK else _MAX_COL_BLOCK
    target_r = max(1, block_bytes // (bc * out_itemsize))
    if target_r >= R:
        br = R
    else:
        br = max(sub_mult, (target_r // sub_mult) * sub_mult)

    lead = oshape[:-2]
    grid = tuple(lead) + (pl.cdiv(R, br), pl.cdiv(C, bc))

    def in_spec(shape):
        bshape = tuple(1 for _ in lead) + (
            br if shape[-2] == R else 1,
            bc if shape[-1] == C else 1,
        )
        flags = tuple(s == o for s, o in zip(shape, oshape))

        def index_map(*idx):
            # block 0 along broadcast axes, grid index elsewhere.
            return tuple(i if f else 0 for i, f in zip(idx, flags))

        return pl.BlockSpec(bshape, index_map)

    out_bshape = tuple(1 for _ in lead) + (br, bc)
    out_spec = pl.BlockSpec(out_bshape, lambda *idx: idx)

    bytes_accessed = (x.size * x.dtype.itemsize + y.size * y.dtype.itemsize
                      + total * out_itemsize)

    out = pl.pallas_call(
        _min_kernel,
        out_shape=jax.ShapeDtypeStruct(oshape, out_dtype),
        grid=grid,
        in_specs=[in_spec(xshape), in_spec(yshape)],
        out_specs=out_spec,
        compiler_params=pltpu.CompilerParams(
            dimension_semantics=("parallel",) * len(grid),
            vmem_limit_bytes=vmem_limit,
        ),
        cost_estimate=pl.CostEstimate(
            flops=total, transcendentals=0, bytes_accessed=bytes_accessed),
    )(x, y)
    return out.reshape(out_shape)


def pallas_min(x, y):
    """Elementwise torch.min(x, y) with NumPy/PyTorch-style broadcasting."""
    x = jnp.asarray(x)
    y = jnp.asarray(y)
    out_shape = jnp.broadcast_shapes(x.shape, y.shape)
    # NOTE: follows jnp.result_type promotion (matches torch for the
    # float/bf16 cases this module targets).
    out_dtype = jnp.result_type(x.dtype, y.dtype)
    total = math.prod(out_shape) if out_shape else 1

    if total == 0:
        # Empty output: nothing to compute, avoid an illegal zero-size grid.
        return jnp.zeros(out_shape, out_dtype)

    block_bytes, vmem_limit = _block_budget()

    if x.shape == y.shape and total % 128 == 0:
        out2 = _fast_call(x, y, out_dtype, total, block_bytes, vmem_limit)
        return out2.reshape(out_shape)

    # TODO(synk): collapse broadcast-compatible leading dims into the row axis
    # so large broadcast inputs get bigger (fewer) blocks.
    return _generic_call(x, y, out_shape, out_dtype, total, block_bytes,
                         vmem_limit)


if __name__ == "__main__":
    key = jax.random.PRNGKey(0)
    kx, ky, kz, kw = jax.random.split(key, 4)

    # Small NCHW shapes consistent with the module's elementwise forward.
    x = jax.random.normal(kx, (2, 4, 16, 16), dtype=jnp.float32)
    y = jax.random.normal(ky, (2, 4, 16, 16), dtype=jnp.float32)

    out = pallas_min(x, y)
    jax.block_until_ready(out)
    ref = jnp.minimum(x, y)
    assert out.shape == ref.shape and out.dtype == ref.dtype
    assert jnp.array_equal(out, ref), "mismatch vs jnp.minimum reference"

    # Broadcasting path (torch.min broadcasts too) -- handled in-kernel.
    z = jax.random.normal(kz, (1, 4, 1, 16), dtype=jnp.float32)
    out_b = pallas_min(x, z)
    jax.block_until_ready(out_b)
    ref_b = jnp.minimum(x, z)
    assert out_b.shape == ref_b.shape
    assert jnp.array_equal(out_b, ref_b), "broadcast mismatch vs jnp.minimum"

    # Mixed dtype: bf16 operand streams at 2 B/elem, cast happens in VMEM.
    w = jax.random.normal(kw, (2, 4, 16, 16), dtype=jnp.bfloat16)
    out_m = pallas_min(w, y)
    jax.block_until_ready(out_m)
    ref_m = jnp.minimum(w, y)
    assert out_m.dtype == ref_m.dtype
    assert jnp.array_equal(out_m, ref_m), "mixed-dtype mismatch"

    # Ragged element count (not a multiple of 128): masked tail blocks.
    r1 = jax.random.normal(kx, (3, 5, 7), dtype=jnp.float32)
    r2 = jax.random.normal(ky, (3, 5, 7), dtype=jnp.float32)
    out_r = pallas_min(r1, r2)
    jax.block_until_ready(out_r)
    assert jnp.array_equal(out_r, jnp.minimum(r1, r2)), "ragged mismatch"

    print("KERNEL_OK")
</pallas_src>

<mosaic_0001>
module attributes {stable_mosaic.version = 11 : i64} {
  func.func @_min_kernel(%arg0: i32, %arg1: memref<1x2048xf32, #tpu.memory_space<vmem>>, %arg2: memref<1x2048xf32, #tpu.memory_space<vmem>>, %arg3: memref<1x2048xf32, #tpu.memory_space<vmem>>) attributes {dimension_semantics = [#tpu.dimension_semantics<parallel>], iteration_bounds = array<i64: 1>, scalar_prefetch = 0 : i64, scratch_operands = 0 : i64, tpu.core_type = #tpu.core_type<tc>, window_params = [{transform_indices = @transform_0, window_bounds = array<i64: 1, 2048>}, {transform_indices = @transform_1, window_bounds = array<i64: 1, 2048>}, {transform_indices = @transform_2, window_bounds = array<i64: 1, 2048>}]} {
    %c0 = arith.constant 0 : index
    %c0_0 = arith.constant 0 : index
    %0 = vector.load %arg1[%c0, %c0_0] : memref<1x2048xf32, #tpu.memory_space<vmem>>, vector<1x2048xf32>
    %c0_1 = arith.constant 0 : index
    %c0_2 = arith.constant 0 : index
    %1 = vector.load %arg2[%c0_1, %c0_2] : memref<1x2048xf32, #tpu.memory_space<vmem>>, vector<1x2048xf32>
    %2 = arith.minimumf %0, %1 : vector<1x2048xf32>
    %c0_3 = arith.constant 0 : index
    %c0_4 = arith.constant 0 : index
    %3 = vector.load %arg3[%c0_3, %c0_4] : memref<1x2048xf32, #tpu.memory_space<vmem>>, vector<1x2048xf32>
    tpu.vector_store %arg3[%c0_3, %c0_4], %2 {strides = array<i32>} : memref<1x2048xf32, #tpu.memory_space<vmem>>, vector<1x2048xf32>,
    return
  }
  func.func @transform_0(%arg0: i32) -> (i32, i32) {
    %c0_i32 = arith.constant 0 : i32
    %c0_i32_0 = arith.constant 0 : i32
    return %arg0, %c0_i32 : i32, i32
  }
  func.func @transform_1(%arg0: i32) -> (i32, i32) {
    %c0_i32 = arith.constant 0 : i32
    %c0_i32_0 = arith.constant 0 : i32
    return %arg0, %c0_i32 : i32, i32
  }
  func.func @transform_2(%arg0: i32) -> (i32, i32) {
    %c0_i32 = arith.constant 0 : i32
    %c0_i32_0 = arith.constant 0 : i32
    return %arg0, %c0_i32 : i32, i32
  }
}

</mosaic_0001>

<bundles_post_ra>
// kernel: tpu_custom_call.1
= control target key start
LH: loop header
LB: loop body
LE: loop exit
PB: predicated region body
PF: predicated region fallthrough
CT: control target
= control target key end

     0   :  { %7 = vsyncpa [#allocation3], 0  ;;  %s156_s0 = inlined_call_operand.hbm [shape: f32[1,2048], index: 0, kind: input, shape index: {}]   ;;  %s157_s1 = inlined_call_operand.hbm [shape: f32[1,2048], index: 1, kind: input, shape index: {}]   ;;  %s158_s2 = inlined_call_operand.hbm [shape: f32[1,2048], index: 2, kind: output, shape index: {}]  }
   0x1   :  { %8 = vsyncpa [#allocation6], 0 }
   0x2   :  { %9 = vsyncpa [#allocation4], 0  ;;  %s129_s9 = smov [#allocation2]   ;;  %s130_s11 = smov [#allocation5]  }
   0x3   :  { %s16_s10 = sshll.u32 %s129_s9, 4  ;;  %s26_s12 = sshll.u32 %s130_s11, 4  ;;  %s17_s10 = int_to_ptr.vmem [resolvable:$true] %s16_s10  ;;  %s27_s12 = int_to_ptr.vmem [resolvable:$true] %s26_s12 }
   0x4   :  { %s71_s13 = scalar_lea.vmem %s17_s10, 256  ;;  %p76_p1 = scmp.lt.s32.totalorder %s17_s10, %s17_s10 }
   0x5   :  { %p72_p0 = scmp.ne.s32.totalorder %s17_s10, %s71_s13  ;;  %p77_p2 = scmp.lt.s32.totalorder %s71_s13, %s71_s13 }
   0x7   :  { %p78_p3 = por %p77_p2, %p76_p1 }
   0x9   :  { %p79_p4 = pnand %p78_p3, %p72_p0 }
   0xb   :  { %82 = shalt.err (!%p79_p4)
}
   0xc   :  { %19 = dma.hbm_to_vmem [thread:$0]  %s156_s0, 256, %s17_s10, [#allocation3]  }
   0xd   :  { %s91_s16 = scalar_lea.vmem %s27_s12, 256  ;;  %p96_p6 = scmp.lt.s32.totalorder %s27_s12, %s27_s12 }
   0xe   :  { %p92_p5 = scmp.ne.s32.totalorder %s27_s12, %s91_s16  ;;  %p97_p7 = scmp.lt.s32.totalorder %s91_s16, %s91_s16 }
  0x10   :  { %p98_p8 = por %p97_p7, %p96_p6 }
  0x12   :  { %p99_p9 = pnand %p98_p8, %p92_p5 }
  0x14   :  { %102 = shalt.err (!%p99_p9)
}
  0x15   :  { %29 = dma.hbm_to_vmem [thread:$0]  %s157_s1, 256, %s27_s12, [#allocation6]  }
  0x16   :  { %123 = dma.done.wait [#allocation3], 256  }
  0x17   :  { %124 = vsyncadd [#allocation3], 4294967040 }
  0x18   :  { %125 = dma.done.wait [#allocation6], 256  }
  0x19   :  { %126 = vsyncadd [#allocation6], 4294967040  ;;  %s131_s19 = smov [#allocation7]   ;;  %v36_v0 = vld [vmem:[#allocation2] sm:$0xff]  ;;  %v38_v1 = vld [vmem:[#allocation5] sm:$0xff] }
  0x1a   :  { %s50_s20 = sshll.u32 %s131_s19, 4  ;;  %v37_v2 = vld [vmem:[#allocation2 + $0x8] sm:$0xff]  ;;  %v40_v3 = vmin.f32 %v36_v0, %v38_v1  ;;  %v39_v4 = vld [vmem:[#allocation5 + $0x8] sm:$0xff]  ;;  %s51_s20 = int_to_ptr.vmem [resolvable:$true] %s50_s20 }
  0x1b   :  { %v41_v5 = vmin.f32 %v37_v2, %v39_v4  ;;  %s103_s0 = scalar_lea.vmem %s51_s20, 256  ;;  %p108_p11 = scmp.lt.s32.totalorder %s51_s20, %s51_s20 }
  0x1c   :  { %42 = vst [vmem:[#allocation7] sm:$0xff] %v40_v3  ;;  %p104_p10 = scmp.ne.s32.totalorder %s51_s20, %s103_s0  ;;  %p109_p12 = scmp.lt.s32.totalorder %s103_s0, %s103_s0 }
  0x1d   :  { %43 = vst [vmem:[#allocation7 + $0x8] sm:$0xff] %v41_v5 }
  0x1e   :  { %p110_p13 = por %p109_p12, %p108_p11 }
  0x20   :  { %p111_p0 = pnand %p110_p13, %p104_p10 }
  0x22   :  { %114 = shalt.err (!%p111_p0)
}
  0x23   :  { %53 = dma.vmem_to_hbm [thread:$0]  %s51_s20, 256, %s158_s2, [#allocation4]  }
  0x24   :  { %127 = dma.done.wait [#allocation4], 256  }
  0x25   :  { %128 = vsyncadd [#allocation4], 4294967040 }
  0x26   :  { %57 = vsyncpa [#allocation3], 1 }
  0x27   :  { %58 = vsyncpa [#allocation6], 1 }
  0x28   :  { %59 = vsyncpa [#allocation4], 1 }

</bundles_post_ra>
